<compile_context>
chip_gen: v7x
topology: tpu7x:2x2x1
jax: 0.10.0
libtpu: 0.0.40
codegen_flags: <defaults>
</compile_context>

<pallas_src>
import functools

import jax
import jax.numpy as jnp
from jax.experimental import pallas as pl
from jax.experimental.pallas import tpu as pltpu

_LANE = 128
_SUBLANE = 8


def _round_up(n, m):
    return ((n + m - 1) // m) * m


def _actor_kernel(ma_ref, x_ref, w1_ref, b1_ref, w2_ref, b2_ref,
                  w3_ref, b3_ref, out_ref):
    ma = ma_ref[0]  # max_action scalar from SMEM
    # Layer 1: bf16 MXU operands, f32 accumulation, f32 epilogue.
    a = jnp.dot(x_ref[...], w1_ref[...], preferred_element_type=jnp.float32)
    a = jnp.maximum(a + b1_ref[...], 0.0)
    # Layer 2
    a = jnp.dot(a.astype(jnp.bfloat16), w2_ref[...],
                preferred_element_type=jnp.float32)
    a = jnp.maximum(a + b2_ref[...], 0.0)
    # Layer 3 + max_action * tanh epilogue (f32 on VPU/EUP)
    a = jnp.dot(a.astype(jnp.bfloat16), w3_ref[...],
                preferred_element_type=jnp.float32)
    out_ref[...] = (ma * jnp.tanh(a + b3_ref[...])).astype(out_ref.dtype)


@functools.partial(jax.jit, static_argnames=("batch_tile",))
def actor_forward(state, params, max_action, *, batch_tile=512):
    """state: (B, state_dim) f32. params: dict of w1,b1,w2,b2,w3,b3 with weights as (in,out).
    max_action: scalar (traced; changing it does not retrace)."""
    w1, b1 = params["w1"], params["b1"]
    w2, b2 = params["w2"], params["b2"]
    w3, b3 = params["w3"], params["b3"]

    B, S = state.shape
    H = w1.shape[1]
    A = w3.shape[1]

    # Lane-friendly padded sizes (multiples of 128 on every contracted / output dim).
    S_p = _round_up(S, _LANE)
    H_p = _round_up(H, _LANE)
    A_p = _round_up(A, _LANE)

    # Batch tile: multiple of 8 sublanes; large tiles amortize the ~0.35us/step overhead.
    TB = min(batch_tile, _round_up(B, _SUBLANE))
    B_p = _round_up(B, TB)
    nB = B_p // TB

    f32, bf16 = jnp.float32, jnp.bfloat16

    # Zero-padding is math-preserving here: padded weight columns / bias entries are zero,
    # so padded hidden/action lanes stay exactly zero through relu/tanh and padded batch
    # rows are sliced away below.
    x_p = jnp.zeros((B_p, S_p), bf16).at[:B, :S].set(state.astype(bf16))
    w1_p = jnp.zeros((S_p, H_p), bf16).at[:S, :H].set(w1.astype(bf16))
    w2_p = jnp.zeros((H_p, H_p), bf16).at[:H, :H].set(w2.astype(bf16))
    w3_p = jnp.zeros((H_p, A_p), bf16).at[:H, :A].set(w3.astype(bf16))
    b1_p = jnp.zeros((1, H_p), f32).at[:, :H].set(b1.astype(f32))
    b2_p = jnp.zeros((1, H_p), f32).at[:, :H].set(b2.astype(f32))
    b3_p = jnp.zeros((1, A_p), f32).at[:, :A].set(b3.astype(f32))
    ma = jnp.asarray(max_action, f32).reshape((1,))

    # VMEM budget: double-buffered x/out tiles + (also double-buffered) resident weights.
    est = (2 * TB * S_p * 2                                  # x blocks (bf16)
           + 2 * TB * A_p * 4                                # out blocks (f32)
           + 2 * (S_p * H_p + H_p * H_p + H_p * A_p) * 2     # weights (bf16)
           + 2 * (2 * H_p + A_p) * 4)                        # biases (f32)
    vmem_limit = int(min(max(2 * est, 8 << 20), 48 << 20))   # headroom, safe on 64 MiB v7x

    flops = 2 * B_p * (S_p * H_p + H_p * H_p + H_p * A_p)
    bytes_accessed = (x_p.size * 2
                      + (w1_p.size + w2_p.size + w3_p.size) * 2
                      + (b1_p.size + b2_p.size + b3_p.size) * 4
                      + B_p * A_p * 4)

    out_p = pl.pallas_call(
        _actor_kernel,
        out_shape=jax.ShapeDtypeStruct((B_p, A_p), f32),
        grid_spec=pltpu.PrefetchScalarGridSpec(
            num_scalar_prefetch=0,
            grid=(nB,),
            in_specs=[
                pl.BlockSpec(memory_space=pltpu.MemorySpace.SMEM),   # max_action scalar
                pl.BlockSpec((TB, S_p), lambda i: (i, 0)),           # x   (batch-tiled)
                pl.BlockSpec((S_p, H_p), lambda i: (0, 0)),          # w1  (VMEM-resident)
                pl.BlockSpec((1, H_p), lambda i: (0, 0)),            # b1
                pl.BlockSpec((H_p, H_p), lambda i: (0, 0)),          # w2
                pl.BlockSpec((1, H_p), lambda i: (0, 0)),            # b2
                pl.BlockSpec((H_p, A_p), lambda i: (0, 0)),          # w3
                pl.BlockSpec((1, A_p), lambda i: (0, 0)),            # b3
            ],
            out_specs=pl.BlockSpec((TB, A_p), lambda i: (i, 0)),
        ),
        compiler_params=pltpu.CompilerParams(
            dimension_semantics=("parallel",),
            vmem_limit_bytes=vmem_limit,
        ),
        cost_estimate=pl.CostEstimate(
            flops=int(flops),
            transcendentals=int(B_p * A_p),
            bytes_accessed=int(bytes_accessed),
        ),
    )(ma, x_p, w1_p, b1_p, w2_p, b2_p, w3_p, b3_p)

    return out_p[:B, :A]


def init_actor_params(key, state_dim, hidden_dim, action_dim):
    """Deterministic init mimicking nn.Linear defaults (uniform +/- 1/sqrt(fan_in)).
    Weights stored as (in_features, out_features)."""
    ks = jax.random.split(key, 6)

    def linear(kw, kb, fan_in, fan_out):
        bound = 1.0 / jnp.sqrt(fan_in)
        w = jax.random.uniform(kw, (fan_in, fan_out), jnp.float32, -bound, bound)
        b = jax.random.uniform(kb, (1, fan_out), jnp.float32, -bound, bound)
        return w, b

    w1, b1 = linear(ks[0], ks[1], state_dim, hidden_dim)
    w2, b2 = linear(ks[2], ks[3], hidden_dim, hidden_dim)
    w3, b3 = linear(ks[4], ks[5], hidden_dim, action_dim)
    return dict(w1=w1, b1=b1, w2=w2, b2=b2, w3=w3, b3=b3)


if __name__ == "__main__":
    batch = 2
    state_dim = 8
    hidden_dim = 32
    action_dim = 4
    max_action = 1.0

    key = jax.random.PRNGKey(0)
    k_param, k_state = jax.random.split(key)
    params = init_actor_params(k_param, state_dim, hidden_dim, action_dim)
    state = jax.random.normal(k_state, (batch, state_dim), jnp.float32)

    out = actor_forward(state, params, max_action)
    out = jax.block_until_ready(out)
    assert out.shape == (batch, action_dim)

    # Reference 1: same bf16-operand / f32-accumulate math as the kernel (tight check).
    bf = jnp.bfloat16
    a = jnp.maximum(jnp.dot(state.astype(bf), params["w1"].astype(bf),
                            preferred_element_type=jnp.float32) + params["b1"], 0.0)
    a = jnp.maximum(jnp.dot(a.astype(bf), params["w2"].astype(bf),
                            preferred_element_type=jnp.float32) + params["b2"], 0.0)
    ref_bf16 = max_action * jnp.tanh(
        jnp.dot(a.astype(bf), params["w3"].astype(bf),
                preferred_element_type=jnp.float32) + params["b3"])

    # Reference 2: full-f32 math of the PyTorch module (loose check for bf16 rounding).
    a = jnp.maximum(state @ params["w1"] + params["b1"], 0.0)
    a = jnp.maximum(a @ params["w2"] + params["b2"], 0.0)
    ref_f32 = max_action * jnp.tanh(a @ params["w3"] + params["b3"])

    assert jnp.allclose(out, ref_bf16, atol=2e-4, rtol=2e-4), (out, ref_bf16)
    assert jnp.allclose(out, ref_f32, atol=5e-2, rtol=5e-2), (out, ref_f32)

    print("KERNEL_OK")
</pallas_src>

<mosaic_0001>
module attributes {stable_mosaic.version = 11 : i64} {
  func.func @_actor_kernel(%arg0: i32, %arg1: memref<1xf32, #tpu.memory_space<smem>>, %arg2: memref<8x128xbf16, #tpu.memory_space<vmem>>, %arg3: memref<128x128xbf16, #tpu.memory_space<vmem>>, %arg4: memref<1x128xf32, #tpu.memory_space<vmem>>, %arg5: memref<128x128xbf16, #tpu.memory_space<vmem>>, %arg6: memref<1x128xf32, #tpu.memory_space<vmem>>, %arg7: memref<128x128xbf16, #tpu.memory_space<vmem>>, %arg8: memref<1x128xf32, #tpu.memory_space<vmem>>, %arg9: memref<8x128xf32, #tpu.memory_space<vmem>>) attributes {dimension_semantics = [#tpu.dimension_semantics<parallel>], iteration_bounds = array<i64: 1>, scalar_prefetch = 0 : i64, scratch_operands = 0 : i64, tpu.core_type = #tpu.core_type<tc>, window_params = [{transform_indices = @transform_0, window_bounds = array<i64: 1>}, {transform_indices = @transform_1, window_bounds = array<i64: 8, 128>}, {pipeline_mode = #tpu.pipeline_mode<synchronous>, transform_indices = @transform_2, window_bounds = array<i64: 128, 128>}, {pipeline_mode = #tpu.pipeline_mode<synchronous>, transform_indices = @transform_3, window_bounds = array<i64: 1, 128>}, {pipeline_mode = #tpu.pipeline_mode<synchronous>, transform_indices = @transform_4, window_bounds = array<i64: 128, 128>}, {pipeline_mode = #tpu.pipeline_mode<synchronous>, transform_indices = @transform_5, window_bounds = array<i64: 1, 128>}, {pipeline_mode = #tpu.pipeline_mode<synchronous>, transform_indices = @transform_6, window_bounds = array<i64: 128, 128>}, {pipeline_mode = #tpu.pipeline_mode<synchronous>, transform_indices = @transform_7, window_bounds = array<i64: 1, 128>}, {transform_indices = @transform_8, window_bounds = array<i64: 8, 128>}]} {
    %c0 = arith.constant 0 : index
    %0 = memref.load %arg1[%c0] : memref<1xf32, #tpu.memory_space<smem>>
    %c0_0 = arith.constant 0 : index
    %c0_1 = arith.constant 0 : index
    %1 = vector.load %arg2[%c0_0, %c0_1] : memref<8x128xbf16, #tpu.memory_space<vmem>>, vector<8x128xbf16>
    %c0_2 = arith.constant 0 : index
    %c0_3 = arith.constant 0 : index
    %2 = vector.load %arg3[%c0_2, %c0_3] : memref<128x128xbf16, #tpu.memory_space<vmem>>, vector<128x128xbf16>
    %cst = arith.constant dense<0.000000e+00> : vector<8x128xf32>
    %3 = tpu.matmul %1, %2, %cst {dimension_numbers = #tpu.dot_dimension_numbers<[1], [0], [0], [1], [0, 0, 1, 1], [], []>} : vector<8x128xbf16>, vector<128x128xbf16>, vector<8x128xf32> -> vector<8x128xf32>
    %c0_4 = arith.constant 0 : index
    %c0_5 = arith.constant 0 : index
    %4 = vector.load %arg4[%c0_4, %c0_5] : memref<1x128xf32, #tpu.memory_space<vmem>>, vector<1x128xf32>
    %5 = vector.broadcast %4 : vector<1x128xf32> to vector<8x128xf32>
    %6 = arith.addf %3, %5 : vector<8x128xf32>
    %cst_6 = arith.constant 0.000000e+00 : f32
    %7 = vector.broadcast %cst_6 : f32 to vector<8x128xf32>
    %8 = arith.maximumf %6, %7 : vector<8x128xf32>
    %9 = arith.truncf %8 : vector<8x128xf32> to vector<8x128xbf16>
    %c0_7 = arith.constant 0 : index
    %c0_8 = arith.constant 0 : index
    %10 = vector.load %arg5[%c0_7, %c0_8] : memref<128x128xbf16, #tpu.memory_space<vmem>>, vector<128x128xbf16>
    %cst_9 = arith.constant dense<0.000000e+00> : vector<8x128xf32>
    %11 = tpu.matmul %9, %10, %cst_9 {dimension_numbers = #tpu.dot_dimension_numbers<[1], [0], [0], [1], [0, 0, 1, 1], [], []>} : vector<8x128xbf16>, vector<128x128xbf16>, vector<8x128xf32> -> vector<8x128xf32>
    %c0_10 = arith.constant 0 : index
    %c0_11 = arith.constant 0 : index
    %12 = vector.load %arg6[%c0_10, %c0_11] : memref<1x128xf32, #tpu.memory_space<vmem>>, vector<1x128xf32>
    %13 = vector.broadcast %12 : vector<1x128xf32> to vector<8x128xf32>
    %14 = arith.addf %11, %13 : vector<8x128xf32>
    %cst_12 = arith.constant 0.000000e+00 : f32
    %15 = vector.broadcast %cst_12 : f32 to vector<8x128xf32>
    %16 = arith.maximumf %14, %15 : vector<8x128xf32>
    %17 = arith.truncf %16 : vector<8x128xf32> to vector<8x128xbf16>
    %c0_13 = arith.constant 0 : index
    %c0_14 = arith.constant 0 : index
    %18 = vector.load %arg7[%c0_13, %c0_14] : memref<128x128xbf16, #tpu.memory_space<vmem>>, vector<128x128xbf16>
    %cst_15 = arith.constant dense<0.000000e+00> : vector<8x128xf32>
    %19 = tpu.matmul %17, %18, %cst_15 {dimension_numbers = #tpu.dot_dimension_numbers<[1], [0], [0], [1], [0, 0, 1, 1], [], []>} : vector<8x128xbf16>, vector<128x128xbf16>, vector<8x128xf32> -> vector<8x128xf32>
    %c0_16 = arith.constant 0 : index
    %c0_17 = arith.constant 0 : index
    %20 = vector.load %arg8[%c0_16, %c0_17] : memref<1x128xf32, #tpu.memory_space<vmem>>, vector<1x128xf32>
    %21 = vector.broadcast %20 : vector<1x128xf32> to vector<8x128xf32>
    %22 = arith.addf %19, %21 : vector<8x128xf32>
    %23 = math.tanh %22 : vector<8x128xf32>
    %24 = vector.broadcast %0 : f32 to vector<8x128xf32>
    %25 = arith.mulf %24, %23 : vector<8x128xf32>
    %c0_18 = arith.constant 0 : index
    %c0_19 = arith.constant 0 : index
    %26 = vector.load %arg9[%c0_18, %c0_19] : memref<8x128xf32, #tpu.memory_space<vmem>>, vector<8x128xf32>
    tpu.vector_store %arg9[%c0_18, %c0_19], %25 {strides = array<i32>} : memref<8x128xf32, #tpu.memory_space<vmem>>, vector<8x128xf32>,
    return
  }
  func.func @transform_0(%arg0: i32) -> i32 {
    %c0_i32 = arith.constant 0 : i32
    %c0_i32_0 = arith.constant 0 : i32
    return %c0_i32 : i32
  }
  func.func @transform_1(%arg0: i32) -> (i32, i32) {
    %c0_i32 = arith.constant 0 : i32
    %c0_i32_0 = arith.constant 0 : i32
    return %arg0, %c0_i32 : i32, i32
  }
  func.func @transform_2(%arg0: i32) -> (i32, i32) {
    %c0_i32 = arith.constant 0 : i32
    %c0_i32_0 = arith.constant 0 : i32
    %c0_i32_1 = arith.constant 0 : i32
    return %c0_i32, %c0_i32_0 : i32, i32
  }
  func.func @transform_3(%arg0: i32) -> (i32, i32) {
    %c0_i32 = arith.constant 0 : i32
    %c0_i32_0 = arith.constant 0 : i32
    %c0_i32_1 = arith.constant 0 : i32
    return %c0_i32, %c0_i32_0 : i32, i32
  }
  func.func @transform_4(%arg0: i32) -> (i32, i32) {
    %c0_i32 = arith.constant 0 : i32
    %c0_i32_0 = arith.constant 0 : i32
    %c0_i32_1 = arith.constant 0 : i32
    return %c0_i32, %c0_i32_0 : i32, i32
  }
  func.func @transform_5(%arg0: i32) -> (i32, i32) {
    %c0_i32 = arith.constant 0 : i32
    %c0_i32_0 = arith.constant 0 : i32
    %c0_i32_1 = arith.constant 0 : i32
    return %c0_i32, %c0_i32_0 : i32, i32
  }
  func.func @transform_6(%arg0: i32) -> (i32, i32) {
    %c0_i32 = arith.constant 0 : i32
    %c0_i32_0 = arith.constant 0 : i32
    %c0_i32_1 = arith.constant 0 : i32
    return %c0_i32, %c0_i32_0 : i32, i32
  }
  func.func @transform_7(%arg0: i32) -> (i32, i32) {
    %c0_i32 = arith.constant 0 : i32
    %c0_i32_0 = arith.constant 0 : i32
    %c0_i32_1 = arith.constant 0 : i32
    return %c0_i32, %c0_i32_0 : i32, i32
  }
  func.func @transform_8(%arg0: i32) -> (i32, i32) {
    %c0_i32 = arith.constant 0 : i32
    %c0_i32_0 = arith.constant 0 : i32
    return %arg0, %c0_i32 : i32, i32
  }
}

</mosaic_0001>

<bundles_post_ra>
// kernel: actor_forward.1
= control target key start
LH: loop header
LB: loop body
LE: loop exit
PB: predicated region body
PF: predicated region fallthrough
CT: control target
= control target key end

     0   :  { %v520_v0 = vmov 0.0   ;;  %vm521_vm0 = vmmov 0   ;;  %s687_s2 = inlined_call_operand.vmem [shape: bf16[128,128], index: 2, kind: input, shape index: {}]   ;;  %s688_s4 = inlined_call_operand.vmem [shape: bf16[128,128], index: 4, kind: input, shape index: {}]   ;;  %s689_s1 = inlined_call_operand.vmem [shape: bf16[8,128], index: 1, kind: input, shape index: {}]   ;;  %s690_s6 = inlined_call_operand.vmem [shape: bf16[128,128], index: 6, kind: input, shape index: {}]   ;;  %s691_s3 = inlined_call_operand.vmem [shape: f32[1,128], index: 3, kind: input, shape index: {}]   ;;  %s692_s5 = inlined_call_operand.vmem [shape: f32[1,128], index: 5, kind: input, shape index: {}]   ;;  %s693_s7 = inlined_call_operand.vmem [shape: f32[1,128], index: 7, kind: input, shape index: {}]   ;;  %s694_s0 = inlined_call_operand.<no memory space> [shape: f32[1], index: 0, kind: input, shape index: {}]   ;;  %s695_s8 = inlined_call_operand.vmem [shape: f32[8,128], index: 8, kind: output, shape index: {}]  }
   0x1   :  { %432 = vmatprep.subr.bf16.mxu0 %v520_v0  ;;  %v494_v1 = vld [vmem:[%s687_s2] sm:$0xff]   ;;  %448 = vmatprep.mubr.msk.bf16.mxu0 %vm521_vm0, %v520_v0  ;;  %v495_v2 = vld [vmem:[%s687_s2 + $0x8] sm:$0xff]   ;;  %v496_v3 = vld [vmem:[%s687_s2 + $0x10] sm:$0xff]   ;;  %v371_v48 = vstv %s694_s0 }
   0x2   :  { %452 = vmatprep.subr.bf16.mxu1 %v520_v0  ;;  %468 = vmatprep.mubr.msk.bf16.mxu1 %vm521_vm0, %v520_v0  ;;  %v502_v4 = vld [vmem:[%s688_s4] sm:$0xff]   ;;  %v497_v5 = vld [vmem:[%s687_s2 + $0x18] sm:$0xff]   ;;  %v503_v6 = vld [vmem:[%s688_s4 + $0x8] sm:$0xff]  }
   0x3   :  { %433 = vmatpush3.bf16.msra.mxu0 %v494_v1  ;;  %453 = vmatpush3.bf16.msra.mxu1 %v502_v4  ;;  %v498_v7 = vld [vmem:[%s687_s2 + $0x20] sm:$0xff]   ;;  %v504_v8 = vld [vmem:[%s688_s4 + $0x10] sm:$0xff]   ;;  %v499_v9 = vld [vmem:[%s687_s2 + $0x28] sm:$0xff]  }
   0x4   :  { %434 = vmatprep.subr.bf16.mxu0 %v520_v0  ;;  %454 = vmatprep.subr.bf16.mxu1 %v520_v0  ;;  %v505_v10 = vld [vmem:[%s688_s4 + $0x18] sm:$0xff]   ;;  %v500_v11 = vld [vmem:[%s687_s2 + $0x30] sm:$0xff]   ;;  %v506_v12 = vld [vmem:[%s688_s4 + $0x20] sm:$0xff]  }
   0x5   :  { %v501_v13 = vld [vmem:[%s687_s2 + $0x38] sm:$0xff]   ;;  %v507_v14 = vld [vmem:[%s688_s4 + $0x28] sm:$0xff]   ;;  %v32_v15 = vld [vmem:[%s689_s1] sm:$0xf] }
   0x6   :  { %v508_v16 = vld [vmem:[%s688_s4 + $0x30] sm:$0xff]   ;;  %v509_v17 = vld [vmem:[%s688_s4 + $0x38] sm:$0xff]   ;;  %v510_v18 = vld [vmem:[%s690_s6] sm:$0xff]  }
   0x7   :  { %435 = vmatpush3.bf16.msra.mxu0 %v495_v2  ;;  %455 = vmatpush3.bf16.msra.mxu1 %v503_v6  ;;  %v511_v19 = vld [vmem:[%s690_s6 + $0x8] sm:$0xff]   ;;  %v512_v20 = vld [vmem:[%s690_s6 + $0x10] sm:$0xff]   ;;  %v513_v21 = vld [vmem:[%s690_s6 + $0x18] sm:$0xff]  }
   0x8   :  { %436 = vmatprep.subr.bf16.mxu0 %v520_v0  ;;  %456 = vmatprep.subr.bf16.mxu1 %v520_v0  ;;  %v514_v22 = vld [vmem:[%s690_s6 + $0x20] sm:$0xff]   ;;  %v515_v23 = vld [vmem:[%s690_s6 + $0x28] sm:$0xff]   ;;  %v516_v32 = vld [vmem:[%s690_s6 + $0x30] sm:$0xff]  }
   0x9   :  { %v378_v24 = vld [vmem:[%s691_s3] ss:$0 sm:$0xff]  ;;  %v517_v33 = vld [vmem:[%s690_s6 + $0x38] sm:$0xff]  }
   0xa   :  { %v387_v34 = vld [vmem:[%s692_s5] ss:$0 sm:$0xff] }
   0xb   :  { %437 = vmatpush3.bf16.msra.mxu0 %v496_v3  ;;  %457 = vmatpush3.bf16.msra.mxu1 %v504_v8  ;;  %v396_v42 = vld [vmem:[%s693_s7] ss:$0 sm:$0xff] }
   0xc   :  { %438 = vmatprep.subr.bf16.mxu0 %v520_v0  ;;  %458 = vmatprep.subr.bf16.mxu1 %v520_v0 }
   0xf   :  { %439 = vmatpush3.bf16.msra.mxu0 %v497_v5  ;;  %459 = vmatpush3.bf16.msra.mxu1 %v505_v10 }
  0x10   :  { %440 = vmatprep.subr.bf16.mxu0 %v520_v0  ;;  %460 = vmatprep.subr.bf16.mxu1 %v520_v0 }
  0x13   :  { %441 = vmatpush3.bf16.msra.mxu0 %v498_v7  ;;  %461 = vmatpush3.bf16.msra.mxu1 %v506_v12 }
  0x14   :  { %442 = vmatprep.subr.bf16.mxu0 %v520_v0  ;;  %462 = vmatprep.subr.bf16.mxu1 %v520_v0 }
  0x17   :  { %443 = vmatpush3.bf16.msra.mxu0 %v499_v9  ;;  %463 = vmatpush3.bf16.msra.mxu1 %v507_v14 }
  0x18   :  { %444 = vmatprep.subr.bf16.mxu0 %v520_v0  ;;  %464 = vmatprep.subr.bf16.mxu1 %v520_v0 }
  0x1b   :  { %445 = vmatpush3.bf16.msra.mxu0 %v500_v11  ;;  %465 = vmatpush3.bf16.msra.mxu1 %v508_v16 }
  0x1c   :  { %446 = vmatprep.subr.bf16.mxu0 %v520_v0  ;;  %466 = vmatprep.subr.bf16.mxu1 %v520_v0 }
  0x1f   :  { %447 = vmatpush3.bf16.msra.mxu0 %v501_v13  ;;  %467 = vmatpush3.bf16.msra.mxu1 %v509_v17 }
  0x20   :  { %472 = vmatprep.subr.bf16.mxu0 %v520_v0 }
  0x22   :  { %449 = vmatmul.mubr.bf16.vlgmr.msra.gmra.mrb[0].mxu0 %v32_v15 }
  0x23   :  { %488 = vmatprep.mubr.msk.bf16.mxu0 %vm521_vm0, %v520_v0  ;;  %473 = vmatpush3.bf16.msra.mxu0 %v510_v18 }
  0x24   :  { %474 = vmatprep.subr.bf16.mxu0 %v520_v0 }
  0x27   :  { %475 = vmatpush3.bf16.msra.mxu0 %v511_v19 }
  0x28   :  { %476 = vmatprep.subr.bf16.mxu0 %v520_v0 }
  0x2b   :  { %477 = vmatpush3.bf16.msra.mxu0 %v512_v20 }
  0x2c   :  { %478 = vmatprep.subr.bf16.mxu0 %v520_v0 }
  0x2f   :  { %479 = vmatpush3.bf16.msra.mxu0 %v513_v21 }
  0x30   :  { %480 = vmatprep.subr.bf16.mxu0 %v520_v0 }
  0x33   :  { %481 = vmatpush3.bf16.msra.mxu0 %v514_v22 }
  0x34   :  { %482 = vmatprep.subr.bf16.mxu0 %v520_v0 }
  0x37   :  { %483 = vmatpush3.bf16.msra.mxu0 %v515_v23 }
  0x38   :  { %484 = vmatprep.subr.bf16.mxu0 %v520_v0 }
  0x3b   :  { %485 = vmatpush3.bf16.msra.mxu0 %v516_v32 }
  0x3c   :  { %486 = vmatprep.subr.bf16.mxu0 %v520_v0 }
  0x3f   :  { %487 = vmatpush3.bf16.msra.mxu0 %v517_v33 }
  0xf5   :  { %v138_v25 = vpop.f32.mrb[0].mxu0 }
  0xf6   :  { %v139_v26 = vadd.f32 %v378_v24, %v138_v25  ;;  %v450_v27 = vpop.f32.mrb[1].mxu0 }
  0xf7   :  { %v141_v28 = vpop.f32.mrb[2].mxu0 }
  0xf8   :  { %v144_v29 = vmax.f32 %v139_v26, 0.0  ;;  %v451_v30 = vpop.f32.mrb[3].mxu0 }
  0xfa   :  { %v145_v31 = vpack.c.bf16 %v144_v29, %v144_v29 }
  0xfc   :  { %469 = vmatmul.mubr.bf16.vlgmr.msra.gmra.mrb[0].mxu1 %v145_v31 }
 0x1cf   :  { %v251_v35 = vpop.f32.mrb[0].mxu1 }
 0x1d0   :  { %v252_v36 = vadd.f32 %v387_v34, %v251_v35  ;;  %v470_v37 = vpop.f32.mrb[1].mxu1 }
 0x1d1   :  { %v254_v38 = vpop.f32.mrb[2].mxu1 }
 0x1d2   :  { %v257_v39 = vmax.f32 %v252_v36, 0.0  ;;  %v471_v40 = vpop.f32.mrb[3].mxu1 }
 0x1d4   :  { %v258_v41 = vpack.c.bf16 %v257_v39, %v257_v39 }
 0x1d6   :  { %489 = vmatmul.mubr.bf16.vlgmr.msra.gmra.mrb[4].mxu0 %v258_v41 }
 0x2a9   :  { %v364_v43 = vpop.f32.mrb[4].mxu0 }
 0x2aa   :  { %v365_v44 = vadd.f32 %v396_v42, %v364_v43  ;;  %v490_v45 = vpop.f32.mrb[5].mxu0 }
 0x2ab   :  { %v367_v46 = vpop.f32.mrb[6].mxu0 }
 0x2ac   :  { %518 = vtanh.f32 %v365_v44  ;;  %v491_v47 = vpop.f32.mrb[7].mxu0 }
 0x2b6   :  { %v519_v49 = vpop.eup %518 }
 0x2b7   :  { %v372_v50 = vmul.f32 %v519_v49, %v371_v48 }
 0x2b9   :  { %373 = vst [vmem:[%s695_s8] sm:$0xff] %v372_v50 }

</bundles_post_ra>
